<compile_context>
chip_gen: v5e
topology: v5e:2x2
jax: 0.10.0
libtpu: 0.0.40
codegen_flags: <defaults>
</compile_context>

<pallas_src>
import functools

import jax
import jax.numpy as jnp
from jax.experimental import pallas as pl
from jax.experimental.pallas import tpu as pltpu


LAMBDA_CLASS = 1.0
LAMBDA_NOOBJ = 10.0
LAMBDA_OBJ = 1.0
LAMBDA_BOX = 10.0


def _bce_with_logits(x, t):
    # numerically stable BCEWithLogits, elementwise (matches PyTorch)
    return jnp.maximum(x, 0.0) - x * t + jnp.log1p(jnp.exp(-jnp.abs(x)))


# Slab channel layout (channel-major, lane-dense), with C = num classes, D = 5 + C:
#   0: p_obj  1: p_x  2: p_y  3: p_w  4: p_h   5 .. 4+C: class logits
#   D+0: t_obj  D+1: t_x  D+2: t_y  D+3: t_w  D+4: t_h  D+5: t_cls
#   D+6: anchor_w  D+7: anchor_h
def _yolo_loss_kernel(aux_ref, out_ref,
                      noobj_bce_acc, obj_bce_acc, se_acc, ce_acc,
                      *, num_classes):
    C = num_classes
    D = 5 + C
    i = pl.program_id(1)
    num_i = pl.num_programs(1)

    @pl.when(i == 0)
    def _init():
        noobj_bce_acc[...] = jnp.zeros_like(noobj_bce_acc)
        obj_bce_acc[...] = jnp.zeros_like(obj_bce_acc)
        se_acc[...] = jnp.zeros_like(se_acc)
        ce_acc[...] = jnp.zeros_like(ce_acc)

    # ---- objectness (every row, lane-dense) ---------------------------------
    p0 = aux_ref[0]                                   # (TB, 128)
    t0 = aux_ref[D + 0]
    obj_m = t0 == 1.0
    noobj_m = t0 == 0.0                               # padded rows carry -1 -> neither

    # shared softplus term: BCEWithLogits(x, t) = base(x) - x * t
    base = jnp.maximum(p0, 0.0) + jnp.log1p(jnp.exp(-jnp.abs(p0)))
    noobj_bce_acc[...] += jnp.where(noobj_m, base, 0.0)     # t == 0 on noobj cells

    # ---- box / IoU / object terms (masked by obj_m) -------------------------
    px, py, pw, ph = aux_ref[1], aux_ref[2], aux_ref[3], aux_ref[4]
    tx, ty, tw, th = aux_ref[D + 1], aux_ref[D + 2], aux_ref[D + 3], aux_ref[D + 4]
    aw, ah = aux_ref[D + 6], aux_ref[D + 7]

    bx = jax.nn.sigmoid(px)
    by = jax.nn.sigmoid(py)
    bw = jnp.exp(pw) * aw
    bh = jnp.exp(ph) * ah

    # IoU (midpoint format), as in intersection_over_union
    ix1 = jnp.maximum(bx - bw * 0.5, tx - tw * 0.5)
    iy1 = jnp.maximum(by - bh * 0.5, ty - th * 0.5)
    ix2 = jnp.minimum(bx + bw * 0.5, tx + tw * 0.5)
    iy2 = jnp.minimum(by + bh * 0.5, ty + th * 0.5)
    inter = jnp.maximum(ix2 - ix1, 0.0) * jnp.maximum(iy2 - iy1, 0.0)
    iou = inter / (jnp.abs(bw * bh) + jnp.abs(tw * th) - inter + 1e-6)

    # object loss numerator: BCE(p0, iou * t0) with t0 == 1 on obj cells
    obj_bce_acc[...] += jnp.where(obj_m, base - p0 * iou, 0.0)

    # box loss numerator: MSE over (sigmoid(x), sigmoid(y), w_logit, log(t/anchor))
    twl = jnp.log(1e-16 + tw / aw)
    thl = jnp.log(1e-16 + th / ah)
    se = ((bx - tx) ** 2 + (by - ty) ** 2 +
          (pw - twl) ** 2 + (ph - thl) ** 2)
    se_acc[...] += jnp.where(obj_m, se, 0.0)

    # ---- class cross-entropy, lane-dense (unrolled over C class channels) ---
    mx = aux_ref[5]
    for c in range(1, C):
        mx = jnp.maximum(mx, aux_ref[5 + c])
    label = aux_ref[D + 5]                            # class id stored as float
    sexp = jnp.zeros_like(mx)
    picked = jnp.zeros_like(mx)
    for c in range(C):
        logit = aux_ref[5 + c]
        sexp += jnp.exp(logit - mx)
        picked += jnp.where(label == float(c), logit, 0.0)
    ce = mx + jnp.log(sexp) - picked
    ce_acc[...] += jnp.where(obj_m, ce, 0.0)

    # ---- finalize: one reduction per accumulator, emit per-core partials ----
    @pl.when(i == num_i - 1)
    def _finalize():
        row = jax.lax.broadcasted_iota(jnp.int32, (8, 128), 0)
        vals = (jnp.where(row == 0, jnp.sum(noobj_bce_acc[...]), 0.0)
                + jnp.where(row == 1, jnp.sum(obj_bce_acc[...]), 0.0)
                + jnp.where(row == 2, jnp.sum(se_acc[...]), 0.0)
                + jnp.where(row == 3, jnp.sum(ce_acc[...]), 0.0))
        out_ref[...] = vals[None].astype(jnp.float32)


def yolo_loss(predictions, target, anchors, *, n_cores=1):
    """predictions: (N, A, S, S, 5+C), target: (N, A, S, S, 6), anchors: (A, 2).

    n_cores=1 for single-TensorCore chips (v5e/v6e); n_cores=2 on v7x makes the
    megacore split explicit via pltpu.CORE_PARALLEL.
    """
    N, A, S1, S2, D = predictions.shape
    C = D - 5
    CH = D + 8
    M = N * A * S1 * S2
    f32 = jnp.float32

    # Tile rows (multiple of 1024 so TB = TM // 128 satisfies the (8, 128) rule).
    TM = 1024
    for cand in (8192, 4096, 2048):
        if M >= cand * n_cores:
            TM = cand
            break
    TB = TM // 128
    n_tiles = -(-M // TM)
    T = -(-n_tiles // n_cores)            # tiles per core
    Mp = n_cores * T * TM
    pad = Mp - M

    # ---- single fused pass: channel-major slab (predictions read exactly once)
    anc_b = jnp.broadcast_to(anchors.reshape(1, A, 1, 1, 2).astype(f32),
                             (N, A, S1, S2, 2))
    slab = jnp.concatenate(
        [predictions.astype(f32), target.astype(f32), anc_b], axis=-1)  # (...,CH)
    slab = jnp.moveaxis(slab, -1, 0).reshape(CH, M)
    if pad:
        pad_cols = (jnp.zeros((CH, pad), f32)
                    .at[D + 0].set(-1.0)      # t_obj sentinel: neither obj nor noobj
                    .at[D + 6].set(1.0)       # benign anchors (avoid 0/0)
                    .at[D + 7].set(1.0))
        slab = jnp.concatenate([slab, pad_cols], axis=1)
    slab3 = slab.reshape(CH, Mp // 128, 128)

    lead_sem = pltpu.CORE_PARALLEL if n_cores > 1 else pltpu.ARBITRARY
    grid_spec = pltpu.PrefetchScalarGridSpec(
        num_scalar_prefetch=0,
        grid=(n_cores, T),
        in_specs=[pl.BlockSpec((CH, TB, 128), lambda c, i: (0, c * T + i, 0))],
        out_specs=pl.BlockSpec((1, 8, 128), lambda c, i: (c, 0, 0)),
        scratch_shapes=[
            pltpu.VMEM((TB, 128), jnp.float32),   # noobj bce sum
            pltpu.VMEM((TB, 128), jnp.float32),   # obj bce sum
            pltpu.VMEM((TB, 128), jnp.float32),   # box se sum
            pltpu.VMEM((TB, 128), jnp.float32),   # class ce sum
        ],
    )
    partials = pl.pallas_call(
        functools.partial(_yolo_loss_kernel, num_classes=C),
        grid_spec=grid_spec,
        out_shape=jax.ShapeDtypeStruct((n_cores, 8, 128), jnp.float32),
        compiler_params=pltpu.CompilerParams(
            dimension_semantics=(lead_sem, pltpu.ARBITRARY)),
    )(slab3)

    sums = jnp.sum(partials[:, :, 0], axis=0)     # (8,)
    s_noobj_bce, s_obj_bce, s_se, s_ce = sums[0], sums[1], sums[2], sums[3]

    # counts computed on the host (target is already touched by the wrapper pass)
    t0 = target[..., 0].astype(f32)
    n_obj = jnp.sum(t0 == 1.0).astype(f32)
    n_noobj = jnp.sum(t0 == 0.0).astype(f32)
    # TODO(synk): n_obj == 0 gives NaN/Inf exactly like the PyTorch reference;
    #             guard with jnp.maximum(n_obj, 1) if that case must be supported.

    no_object_loss = s_noobj_bce / n_noobj
    object_loss = s_obj_bce / n_obj
    box_loss = s_se / (4.0 * n_obj)
    class_loss = s_ce / n_obj
    return (LAMBDA_BOX * box_loss + LAMBDA_OBJ * object_loss
            + LAMBDA_NOOBJ * no_object_loss + LAMBDA_CLASS * class_loss)


def yolo_loss_ref(predictions, target, anchors):
    """Pure-JAX reference with identical semantics (masked means == boolean indexing)."""
    N, A, S1, S2, D = predictions.shape
    pred = predictions.reshape(-1, D).astype(jnp.float32)
    tgt = target.reshape(-1, 6).astype(jnp.float32)
    anc = jnp.broadcast_to(anchors.reshape(1, A, 1, 1, 2),
                           (N, A, S1, S2, 2)).reshape(-1, 2).astype(jnp.float32)

    t0 = tgt[:, 0:1]
    obj = t0 == 1.0
    noobj = t0 == 0.0
    n_obj = jnp.sum(obj)
    n_noobj = jnp.sum(noobj)
    p0 = pred[:, 0:1]

    no_object_loss = jnp.sum(jnp.where(noobj, _bce_with_logits(p0, t0), 0.0)) / n_noobj

    bx = jax.nn.sigmoid(pred[:, 1:2]); by = jax.nn.sigmoid(pred[:, 2:3])
    bw = jnp.exp(pred[:, 3:4]) * anc[:, 0:1]; bh = jnp.exp(pred[:, 4:5]) * anc[:, 1:2]
    tx, ty, tw, th = tgt[:, 1:2], tgt[:, 2:3], tgt[:, 3:4], tgt[:, 4:5]
    ix1 = jnp.maximum(bx - bw / 2, tx - tw / 2); iy1 = jnp.maximum(by - bh / 2, ty - th / 2)
    ix2 = jnp.minimum(bx + bw / 2, tx + tw / 2); iy2 = jnp.minimum(by + bh / 2, ty + th / 2)
    inter = jnp.maximum(ix2 - ix1, 0.0) * jnp.maximum(iy2 - iy1, 0.0)
    iou = inter / (jnp.abs(bw * bh) + jnp.abs(tw * th) - inter + 1e-6)

    object_loss = jnp.sum(jnp.where(obj, _bce_with_logits(p0, iou * t0), 0.0)) / n_obj

    tw_l = jnp.log(1e-16 + tw / anc[:, 0:1]); th_l = jnp.log(1e-16 + th / anc[:, 1:2])
    se = (bx - tx) ** 2 + (by - ty) ** 2 + (pred[:, 3:4] - tw_l) ** 2 + (pred[:, 4:5] - th_l) ** 2
    box_loss = jnp.sum(jnp.where(obj, se, 0.0)) / (4.0 * n_obj)

    logits = pred[:, 5:]
    labels = tgt[:, 5].astype(jnp.int32)
    lse = jax.scipy.special.logsumexp(logits, axis=1)
    picked = jnp.take_along_axis(logits, labels[:, None], axis=1)[:, 0]
    ce = (lse - picked)[:, None]
    class_loss = jnp.sum(jnp.where(obj, ce, 0.0)) / n_obj

    return (LAMBDA_BOX * box_loss + LAMBDA_OBJ * object_loss
            + LAMBDA_NOOBJ * no_object_loss + LAMBDA_CLASS * class_loss)


if __name__ == "__main__":
    key = jax.random.PRNGKey(0)
    N, A, S, C = 2, 3, 8, 4          # batch=2, 3 anchors, 8x8 grid, 4 classes
    D = 5 + C

    k1, k2, k3, k4, k5 = jax.random.split(key, 5)
    predictions = jax.random.normal(k1, (N, A, S, S, D), jnp.float32)

    obj_mask = (jax.random.uniform(k2, (N, A, S, S)) < 0.2).astype(jnp.float32)
    obj_mask = obj_mask.at[0, 0, 0, 0].set(1.0)      # guarantee >=1 positive cell
    xy = jax.random.uniform(k3, (N, A, S, S, 2), minval=0.05, maxval=0.95)
    wh = jax.random.uniform(k4, (N, A, S, S, 2), minval=0.1, maxval=1.5)
    cls = jax.random.randint(k5, (N, A, S, S, 1), 0, C).astype(jnp.float32)
    m = obj_mask[..., None]
    target = jnp.concatenate([m, xy * m, wh * m, cls * m], axis=-1)  # (N,A,S,S,6)

    anchors = jnp.array([[0.28, 0.22], [0.38, 0.48], [0.90, 0.78]], jnp.float32)

    loss = yolo_loss(predictions, target, anchors)
    jax.block_until_ready(loss)

    ref = yolo_loss_ref(predictions, target, anchors)
    assert jnp.allclose(loss, ref, rtol=1e-4, atol=1e-4), (loss, ref)
    print("KERNEL_OK")
</pallas_src>

<mosaic_0001>
module attributes {stable_mosaic.version = 11 : i64} {
  func.func @_yolo_loss_kernel(%arg0: i32, %arg1: i32, %arg2: memref<17x8x128xf32, #tpu.memory_space<vmem>>, %arg3: memref<1x8x128xf32, #tpu.memory_space<vmem>>, %arg4: memref<8x128xf32, #tpu.memory_space<vmem>>, %arg5: memref<8x128xf32, #tpu.memory_space<vmem>>, %arg6: memref<8x128xf32, #tpu.memory_space<vmem>>, %arg7: memref<8x128xf32, #tpu.memory_space<vmem>>) attributes {dimension_semantics = [#tpu.dimension_semantics<arbitrary>, #tpu.dimension_semantics<arbitrary>], iteration_bounds = array<i64: 1, 1>, scalar_prefetch = 0 : i64, scratch_operands = 4 : i64, tpu.core_type = #tpu.core_type<tc>, window_params = [{transform_indices = @transform_0, window_bounds = array<i64: 17, 8, 128>}, {transform_indices = @transform_1, window_bounds = array<i64: 1, 8, 128>}]} {
    %c0_i32 = arith.constant 0 : i32
    %0 = arith.cmpi eq, %arg1, %c0_i32 : i32
    %1 = arith.extui %0 : i1 to i32
    %c0_i32_0 = arith.constant 0 : i32
    %2 = arith.cmpi ne, %1, %c0_i32_0 : i32
    scf.if %2 {
      %cst_97 = arith.constant 0.000000e+00 : f32
      %199 = vector.broadcast %cst_97 : f32 to vector<8x128xf32>
      %c0_98 = arith.constant 0 : index
      %c0_99 = arith.constant 0 : index
      %200 = vector.load %arg4[%c0_98, %c0_99] : memref<8x128xf32, #tpu.memory_space<vmem>>, vector<8x128xf32>
      tpu.vector_store %arg4[%c0_98, %c0_99], %199 {strides = array<i32>} : memref<8x128xf32, #tpu.memory_space<vmem>>, vector<8x128xf32>,
      %cst_100 = arith.constant 0.000000e+00 : f32
      %201 = vector.broadcast %cst_100 : f32 to vector<8x128xf32>
      %c0_101 = arith.constant 0 : index
      %c0_102 = arith.constant 0 : index
      %202 = vector.load %arg5[%c0_101, %c0_102] : memref<8x128xf32, #tpu.memory_space<vmem>>, vector<8x128xf32>
      tpu.vector_store %arg5[%c0_101, %c0_102], %201 {strides = array<i32>} : memref<8x128xf32, #tpu.memory_space<vmem>>, vector<8x128xf32>,
      %cst_103 = arith.constant 0.000000e+00 : f32
      %203 = vector.broadcast %cst_103 : f32 to vector<8x128xf32>
      %c0_104 = arith.constant 0 : index
      %c0_105 = arith.constant 0 : index
      %204 = vector.load %arg6[%c0_104, %c0_105] : memref<8x128xf32, #tpu.memory_space<vmem>>, vector<8x128xf32>
      tpu.vector_store %arg6[%c0_104, %c0_105], %203 {strides = array<i32>} : memref<8x128xf32, #tpu.memory_space<vmem>>, vector<8x128xf32>,
      %cst_106 = arith.constant 0.000000e+00 : f32
      %205 = vector.broadcast %cst_106 : f32 to vector<8x128xf32>
      %c0_107 = arith.constant 0 : index
      %c0_108 = arith.constant 0 : index
      %206 = vector.load %arg7[%c0_107, %c0_108] : memref<8x128xf32, #tpu.memory_space<vmem>>, vector<8x128xf32>
      tpu.vector_store %arg7[%c0_107, %c0_108], %205 {strides = array<i32>} : memref<8x128xf32, #tpu.memory_space<vmem>>, vector<8x128xf32>,
    } else {
    }
    %c0 = arith.constant 0 : index
    %c0_1 = arith.constant 0 : index
    %c0_2 = arith.constant 0 : index
    %3 = vector.load %arg2[%c0, %c0_1, %c0_2] : memref<17x8x128xf32, #tpu.memory_space<vmem>>, vector<1x8x128xf32>
    %4 = vector.shape_cast %3 : vector<1x8x128xf32> to vector<8x128xf32>
    %c9 = arith.constant 9 : index
    %c0_3 = arith.constant 0 : index
    %c0_4 = arith.constant 0 : index
    %5 = vector.load %arg2[%c9, %c0_3, %c0_4] : memref<17x8x128xf32, #tpu.memory_space<vmem>>, vector<1x8x128xf32>
    %6 = vector.shape_cast %5 : vector<1x8x128xf32> to vector<8x128xf32>
    %cst = arith.constant 1.000000e+00 : f32
    %7 = vector.broadcast %cst : f32 to vector<8x128xf32>
    %8 = arith.cmpf oeq, %6, %7 : vector<8x128xf32>
    %cst_5 = arith.constant 0.000000e+00 : f32
    %9 = vector.broadcast %cst_5 : f32 to vector<8x128xf32>
    %10 = arith.cmpf oeq, %6, %9 : vector<8x128xf32>
    %cst_6 = arith.constant 0.000000e+00 : f32
    %11 = vector.broadcast %cst_6 : f32 to vector<8x128xf32>
    %12 = arith.maximumf %4, %11 : vector<8x128xf32>
    %13 = math.absf %4 : vector<8x128xf32>
    %cst_7 = arith.constant 0.000000e+00 : f32
    %14 = vector.broadcast %cst_7 : f32 to vector<8x128xf32>
    %15 = arith.subf %14, %13 : vector<8x128xf32>
    %16 = math.exp %15 : vector<8x128xf32>
    %17 = math.log1p %16 : vector<8x128xf32>
    %18 = arith.addf %12, %17 : vector<8x128xf32>
    %c0_8 = arith.constant 0 : index
    %c0_9 = arith.constant 0 : index
    %19 = vector.load %arg4[%c0_8, %c0_9] : memref<8x128xf32, #tpu.memory_space<vmem>>, vector<8x128xf32>
    %cst_10 = arith.constant 0.000000e+00 : f32
    %20 = vector.broadcast %cst_10 : f32 to vector<8x128xf32>
    %21 = arith.select %10, %18, %20 : vector<8x128xi1>, vector<8x128xf32>
    %22 = arith.addf %19, %21 : vector<8x128xf32>
    %c0_11 = arith.constant 0 : index
    %c0_12 = arith.constant 0 : index
    %23 = vector.load %arg4[%c0_11, %c0_12] : memref<8x128xf32, #tpu.memory_space<vmem>>, vector<8x128xf32>
    tpu.vector_store %arg4[%c0_11, %c0_12], %22 {strides = array<i32>} : memref<8x128xf32, #tpu.memory_space<vmem>>, vector<8x128xf32>,
    %c1 = arith.constant 1 : index
    %c0_13 = arith.constant 0 : index
    %c0_14 = arith.constant 0 : index
    %24 = vector.load %arg2[%c1, %c0_13, %c0_14] : memref<17x8x128xf32, #tpu.memory_space<vmem>>, vector<1x8x128xf32>
    %25 = vector.shape_cast %24 : vector<1x8x128xf32> to vector<8x128xf32>
    %c2 = arith.constant 2 : index
    %c0_15 = arith.constant 0 : index
    %c0_16 = arith.constant 0 : index
    %26 = vector.load %arg2[%c2, %c0_15, %c0_16] : memref<17x8x128xf32, #tpu.memory_space<vmem>>, vector<1x8x128xf32>
    %27 = vector.shape_cast %26 : vector<1x8x128xf32> to vector<8x128xf32>
    %c3 = arith.constant 3 : index
    %c0_17 = arith.constant 0 : index
    %c0_18 = arith.constant 0 : index
    %28 = vector.load %arg2[%c3, %c0_17, %c0_18] : memref<17x8x128xf32, #tpu.memory_space<vmem>>, vector<1x8x128xf32>
    %29 = vector.shape_cast %28 : vector<1x8x128xf32> to vector<8x128xf32>
    %c4 = arith.constant 4 : index
    %c0_19 = arith.constant 0 : index
    %c0_20 = arith.constant 0 : index
    %30 = vector.load %arg2[%c4, %c0_19, %c0_20] : memref<17x8x128xf32, #tpu.memory_space<vmem>>, vector<1x8x128xf32>
    %31 = vector.shape_cast %30 : vector<1x8x128xf32> to vector<8x128xf32>
    %c10 = arith.constant 10 : index
    %c0_21 = arith.constant 0 : index
    %c0_22 = arith.constant 0 : index
    %32 = vector.load %arg2[%c10, %c0_21, %c0_22] : memref<17x8x128xf32, #tpu.memory_space<vmem>>, vector<1x8x128xf32>
    %33 = vector.shape_cast %32 : vector<1x8x128xf32> to vector<8x128xf32>
    %c11 = arith.constant 11 : index
    %c0_23 = arith.constant 0 : index
    %c0_24 = arith.constant 0 : index
    %34 = vector.load %arg2[%c11, %c0_23, %c0_24] : memref<17x8x128xf32, #tpu.memory_space<vmem>>, vector<1x8x128xf32>
    %35 = vector.shape_cast %34 : vector<1x8x128xf32> to vector<8x128xf32>
    %c12 = arith.constant 12 : index
    %c0_25 = arith.constant 0 : index
    %c0_26 = arith.constant 0 : index
    %36 = vector.load %arg2[%c12, %c0_25, %c0_26] : memref<17x8x128xf32, #tpu.memory_space<vmem>>, vector<1x8x128xf32>
    %37 = vector.shape_cast %36 : vector<1x8x128xf32> to vector<8x128xf32>
    %c13 = arith.constant 13 : index
    %c0_27 = arith.constant 0 : index
    %c0_28 = arith.constant 0 : index
    %38 = vector.load %arg2[%c13, %c0_27, %c0_28] : memref<17x8x128xf32, #tpu.memory_space<vmem>>, vector<1x8x128xf32>
    %39 = vector.shape_cast %38 : vector<1x8x128xf32> to vector<8x128xf32>
    %c15 = arith.constant 15 : index
    %c0_29 = arith.constant 0 : index
    %c0_30 = arith.constant 0 : index
    %40 = vector.load %arg2[%c15, %c0_29, %c0_30] : memref<17x8x128xf32, #tpu.memory_space<vmem>>, vector<1x8x128xf32>
    %41 = vector.shape_cast %40 : vector<1x8x128xf32> to vector<8x128xf32>
    %c16 = arith.constant 16 : index
    %c0_31 = arith.constant 0 : index
    %c0_32 = arith.constant 0 : index
    %42 = vector.load %arg2[%c16, %c0_31, %c0_32] : memref<17x8x128xf32, #tpu.memory_space<vmem>>, vector<1x8x128xf32>
    %43 = vector.shape_cast %42 : vector<1x8x128xf32> to vector<8x128xf32>
    %44 = arith.negf %25 : vector<8x128xf32>
    %45 = math.exp %44 : vector<8x128xf32>
    %cst_33 = arith.constant 1.000000e+00 : f32
    %46 = vector.broadcast %cst_33 : f32 to vector<8x128xf32>
    %47 = arith.addf %46, %45 : vector<8x128xf32>
    %48 = arith.divf %46, %47 : vector<8x128xf32>
    %49 = arith.negf %27 : vector<8x128xf32>
    %50 = math.exp %49 : vector<8x128xf32>
    %cst_34 = arith.constant 1.000000e+00 : f32
    %51 = vector.broadcast %cst_34 : f32 to vector<8x128xf32>
    %52 = arith.addf %51, %50 : vector<8x128xf32>
    %53 = arith.divf %51, %52 : vector<8x128xf32>
    %54 = math.exp %29 : vector<8x128xf32>
    %55 = arith.mulf %54, %41 : vector<8x128xf32>
    %56 = math.exp %31 : vector<8x128xf32>
    %57 = arith.mulf %56, %43 : vector<8x128xf32>
    %cst_35 = arith.constant 5.000000e-01 : f32
    %58 = vector.broadcast %cst_35 : f32 to vector<8x128xf32>
    %59 = arith.mulf %55, %58 : vector<8x128xf32>
    %60 = arith.subf %48, %59 : vector<8x128xf32>
    %cst_36 = arith.constant 5.000000e-01 : f32
    %61 = vector.broadcast %cst_36 : f32 to vector<8x128xf32>
    %62 = arith.mulf %37, %61 : vector<8x128xf32>
    %63 = arith.subf %33, %62 : vector<8x128xf32>
    %64 = arith.maximumf %60, %63 : vector<8x128xf32>
    %cst_37 = arith.constant 5.000000e-01 : f32
    %65 = vector.broadcast %cst_37 : f32 to vector<8x128xf32>
    %66 = arith.mulf %57, %65 : vector<8x128xf32>
    %67 = arith.subf %53, %66 : vector<8x128xf32>
    %cst_38 = arith.constant 5.000000e-01 : f32
    %68 = vector.broadcast %cst_38 : f32 to vector<8x128xf32>
    %69 = arith.mulf %39, %68 : vector<8x128xf32>
    %70 = arith.subf %35, %69 : vector<8x128xf32>
    %71 = arith.maximumf %67, %70 : vector<8x128xf32>
    %cst_39 = arith.constant 5.000000e-01 : f32
    %72 = vector.broadcast %cst_39 : f32 to vector<8x128xf32>
    %73 = arith.mulf %55, %72 : vector<8x128xf32>
    %74 = arith.addf %48, %73 : vector<8x128xf32>
    %cst_40 = arith.constant 5.000000e-01 : f32
    %75 = vector.broadcast %cst_40 : f32 to vector<8x128xf32>
    %76 = arith.mulf %37, %75 : vector<8x128xf32>
    %77 = arith.addf %33, %76 : vector<8x128xf32>
    %78 = arith.minimumf %74, %77 : vector<8x128xf32>
    %cst_41 = arith.constant 5.000000e-01 : f32
    %79 = vector.broadcast %cst_41 : f32 to vector<8x128xf32>
    %80 = arith.mulf %57, %79 : vector<8x128xf32>
    %81 = arith.addf %53, %80 : vector<8x128xf32>
    %cst_42 = arith.constant 5.000000e-01 : f32
    %82 = vector.broadcast %cst_42 : f32 to vector<8x128xf32>
    %83 = arith.mulf %39, %82 : vector<8x128xf32>
    %84 = arith.addf %35, %83 : vector<8x128xf32>
    %85 = arith.minimumf %81, %84 : vector<8x128xf32>
    %86 = arith.subf %78, %64 : vector<8x128xf32>
    %cst_43 = arith.constant 0.000000e+00 : f32
    %87 = vector.broadcast %cst_43 : f32 to vector<8x128xf32>
    %88 = arith.maximumf %86, %87 : vector<8x128xf32>
    %89 = arith.subf %85, %71 : vector<8x128xf32>
    %cst_44 = arith.constant 0.000000e+00 : f32
    %90 = vector.broadcast %cst_44 : f32 to vector<8x128xf32>
    %91 = arith.maximumf %89, %90 : vector<8x128xf32>
    %92 = arith.mulf %88, %91 : vector<8x128xf32>
    %93 = arith.mulf %55, %57 : vector<8x128xf32>
    %94 = math.absf %93 : vector<8x128xf32>
    %95 = arith.mulf %37, %39 : vector<8x128xf32>
    %96 = math.absf %95 : vector<8x128xf32>
    %97 = arith.addf %94, %96 : vector<8x128xf32>
    %98 = arith.subf %97, %92 : vector<8x128xf32>
    %cst_45 = arith.constant 9.99999997E-7 : f32
    %99 = vector.broadcast %cst_45 : f32 to vector<8x128xf32>
    %100 = arith.addf %98, %99 : vector<8x128xf32>
    %101 = arith.divf %92, %100 : vector<8x128xf32>
    %c0_46 = arith.constant 0 : index
    %c0_47 = arith.constant 0 : index
    %102 = vector.load %arg5[%c0_46, %c0_47] : memref<8x128xf32, #tpu.memory_space<vmem>>, vector<8x128xf32>
    %103 = arith.mulf %4, %101 : vector<8x128xf32>
    %104 = arith.subf %18, %103 : vector<8x128xf32>
    %cst_48 = arith.constant 0.000000e+00 : f32
    %105 = vector.broadcast %cst_48 : f32 to vector<8x128xf32>
    %106 = arith.select %8, %104, %105 : vector<8x128xi1>, vector<8x128xf32>
    %107 = arith.addf %102, %106 : vector<8x128xf32>
    %c0_49 = arith.constant 0 : index
    %c0_50 = arith.constant 0 : index
    %108 = vector.load %arg5[%c0_49, %c0_50] : memref<8x128xf32, #tpu.memory_space<vmem>>, vector<8x128xf32>
    tpu.vector_store %arg5[%c0_49, %c0_50], %107 {strides = array<i32>} : memref<8x128xf32, #tpu.memory_space<vmem>>, vector<8x128xf32>,
    %109 = arith.divf %37, %41 : vector<8x128xf32>
    %cst_51 = arith.constant 1.000000e-16 : f32
    %110 = vector.broadcast %cst_51 : f32 to vector<8x128xf32>
    %111 = arith.addf %110, %109 : vector<8x128xf32>
    %112 = math.log %111 : vector<8x128xf32>
    %113 = arith.divf %39, %43 : vector<8x128xf32>
    %cst_52 = arith.constant 1.000000e-16 : f32
    %114 = vector.broadcast %cst_52 : f32 to vector<8x128xf32>
    %115 = arith.addf %114, %113 : vector<8x128xf32>
    %116 = math.log %115 : vector<8x128xf32>
    %117 = arith.subf %48, %33 : vector<8x128xf32>
    %118 = arith.mulf %117, %117 : vector<8x128xf32>
    %119 = arith.subf %53, %35 : vector<8x128xf32>
    %120 = arith.mulf %119, %119 : vector<8x128xf32>
    %121 = arith.addf %118, %120 : vector<8x128xf32>
    %122 = arith.subf %29, %112 : vector<8x128xf32>
    %123 = arith.mulf %122, %122 : vector<8x128xf32>
    %124 = arith.addf %121, %123 : vector<8x128xf32>
    %125 = arith.subf %31, %116 : vector<8x128xf32>
    %126 = arith.mulf %125, %125 : vector<8x128xf32>
    %127 = arith.addf %124, %126 : vector<8x128xf32>
    %c0_53 = arith.constant 0 : index
    %c0_54 = arith.constant 0 : index
    %128 = vector.load %arg6[%c0_53, %c0_54] : memref<8x128xf32, #tpu.memory_space<vmem>>, vector<8x128xf32>
    %cst_55 = arith.constant 0.000000e+00 : f32
    %129 = vector.broadcast %cst_55 : f32 to vector<8x128xf32>
    %130 = arith.select %8, %127, %129 : vector<8x128xi1>, vector<8x128xf32>
    %131 = arith.addf %128, %130 : vector<8x128xf32>
    %c0_56 = arith.constant 0 : index
    %c0_57 = arith.constant 0 : index
    %132 = vector.load %arg6[%c0_56, %c0_57] : memref<8x128xf32, #tpu.memory_space<vmem>>, vector<8x128xf32>
    tpu.vector_store %arg6[%c0_56, %c0_57], %131 {strides = array<i32>} : memref<8x128xf32, #tpu.memory_space<vmem>>, vector<8x128xf32>,
    %c5 = arith.constant 5 : index
    %c0_58 = arith.constant 0 : index
    %c0_59 = arith.constant 0 : index
    %133 = vector.load %arg2[%c5, %c0_58, %c0_59] : memref<17x8x128xf32, #tpu.memory_space<vmem>>, vector<1x8x128xf32>
    %134 = vector.shape_cast %133 : vector<1x8x128xf32> to vector<8x128xf32>
    %c6 = arith.constant 6 : index
    %c0_60 = arith.constant 0 : index
    %c0_61 = arith.constant 0 : index
    %135 = vector.load %arg2[%c6, %c0_60, %c0_61] : memref<17x8x128xf32, #tpu.memory_space<vmem>>, vector<1x8x128xf32>
    %136 = vector.shape_cast %135 : vector<1x8x128xf32> to vector<8x128xf32>
    %137 = arith.maximumf %134, %136 : vector<8x128xf32>
    %c7 = arith.constant 7 : index
    %c0_62 = arith.constant 0 : index
    %c0_63 = arith.constant 0 : index
    %138 = vector.load %arg2[%c7, %c0_62, %c0_63] : memref<17x8x128xf32, #tpu.memory_space<vmem>>, vector<1x8x128xf32>
    %139 = vector.shape_cast %138 : vector<1x8x128xf32> to vector<8x128xf32>
    %140 = arith.maximumf %137, %139 : vector<8x128xf32>
    %c8 = arith.constant 8 : index
    %c0_64 = arith.constant 0 : index
    %c0_65 = arith.constant 0 : index
    %141 = vector.load %arg2[%c8, %c0_64, %c0_65] : memref<17x8x128xf32, #tpu.memory_space<vmem>>, vector<1x8x128xf32>
    %142 = vector.shape_cast %141 : vector<1x8x128xf32> to vector<8x128xf32>
    %143 = arith.maximumf %140, %142 : vector<8x128xf32>
    %c14 = arith.constant 14 : index
    %c0_66 = arith.constant 0 : index
    %c0_67 = arith.constant 0 : index
    %144 = vector.load %arg2[%c14, %c0_66, %c0_67] : memref<17x8x128xf32, #tpu.memory_space<vmem>>, vector<1x8x128xf32>
    %145 = vector.shape_cast %144 : vector<1x8x128xf32> to vector<8x128xf32>
    %cst_68 = arith.constant 0.000000e+00 : f32
    %146 = vector.broadcast %cst_68 : f32 to vector<8x128xf32>
    %cst_69 = arith.constant 0.000000e+00 : f32
    %147 = vector.broadcast %cst_69 : f32 to vector<8x128xf32>
    %c5_70 = arith.constant 5 : index
    %c0_71 = arith.constant 0 : index
    %c0_72 = arith.constant 0 : index
    %148 = vector.load %arg2[%c5_70, %c0_71, %c0_72] : memref<17x8x128xf32, #tpu.memory_space<vmem>>, vector<1x8x128xf32>
    %149 = vector.shape_cast %148 : vector<1x8x128xf32> to vector<8x128xf32>
    %150 = arith.subf %149, %143 : vector<8x128xf32>
    %151 = math.exp %150 : vector<8x128xf32>
    %152 = arith.addf %146, %151 : vector<8x128xf32>
    %cst_73 = arith.constant 0.000000e+00 : f32
    %153 = vector.broadcast %cst_73 : f32 to vector<8x128xf32>
    %154 = arith.cmpf oeq, %145, %153 : vector<8x128xf32>
    %cst_74 = arith.constant 0.000000e+00 : f32
    %155 = vector.broadcast %cst_74 : f32 to vector<8x128xf32>
    %156 = arith.select %154, %149, %155 : vector<8x128xi1>, vector<8x128xf32>
    %157 = arith.addf %147, %156 : vector<8x128xf32>
    %c6_75 = arith.constant 6 : index
    %c0_76 = arith.constant 0 : index
    %c0_77 = arith.constant 0 : index
    %158 = vector.load %arg2[%c6_75, %c0_76, %c0_77] : memref<17x8x128xf32, #tpu.memory_space<vmem>>, vector<1x8x128xf32>
    %159 = vector.shape_cast %158 : vector<1x8x128xf32> to vector<8x128xf32>
    %160 = arith.subf %159, %143 : vector<8x128xf32>
    %161 = math.exp %160 : vector<8x128xf32>
    %162 = arith.addf %152, %161 : vector<8x128xf32>
    %cst_78 = arith.constant 1.000000e+00 : f32
    %163 = vector.broadcast %cst_78 : f32 to vector<8x128xf32>
    %164 = arith.cmpf oeq, %145, %163 : vector<8x128xf32>
    %cst_79 = arith.constant 0.000000e+00 : f32
    %165 = vector.broadcast %cst_79 : f32 to vector<8x128xf32>
    %166 = arith.select %164, %159, %165 : vector<8x128xi1>, vector<8x128xf32>
    %167 = arith.addf %157, %166 : vector<8x128xf32>
    %c7_80 = arith.constant 7 : index
    %c0_81 = arith.constant 0 : index
    %c0_82 = arith.constant 0 : index
    %168 = vector.load %arg2[%c7_80, %c0_81, %c0_82] : memref<17x8x128xf32, #tpu.memory_space<vmem>>, vector<1x8x128xf32>
    %169 = vector.shape_cast %168 : vector<1x8x128xf32> to vector<8x128xf32>
    %170 = arith.subf %169, %143 : vector<8x128xf32>
    %171 = math.exp %170 : vector<8x128xf32>
    %172 = arith.addf %162, %171 : vector<8x128xf32>
    %cst_83 = arith.constant 2.000000e+00 : f32
    %173 = vector.broadcast %cst_83 : f32 to vector<8x128xf32>
    %174 = arith.cmpf oeq, %145, %173 : vector<8x128xf32>
    %cst_84 = arith.constant 0.000000e+00 : f32
    %175 = vector.broadcast %cst_84 : f32 to vector<8x128xf32>
    %176 = arith.select %174, %169, %175 : vector<8x128xi1>, vector<8x128xf32>
    %177 = arith.addf %167, %176 : vector<8x128xf32>
    %c8_85 = arith.constant 8 : index
    %c0_86 = arith.constant 0 : index
    %c0_87 = arith.constant 0 : index
    %178 = vector.load %arg2[%c8_85, %c0_86, %c0_87] : memref<17x8x128xf32, #tpu.memory_space<vmem>>, vector<1x8x128xf32>
    %179 = vector.shape_cast %178 : vector<1x8x128xf32> to vector<8x128xf32>
    %180 = arith.subf %179, %143 : vector<8x128xf32>
    %181 = math.exp %180 : vector<8x128xf32>
    %182 = arith.addf %172, %181 : vector<8x128xf32>
    %cst_88 = arith.constant 3.000000e+00 : f32
    %183 = vector.broadcast %cst_88 : f32 to vector<8x128xf32>
    %184 = arith.cmpf oeq, %145, %183 : vector<8x128xf32>
    %cst_89 = arith.constant 0.000000e+00 : f32
    %185 = vector.broadcast %cst_89 : f32 to vector<8x128xf32>
    %186 = arith.select %184, %179, %185 : vector<8x128xi1>, vector<8x128xf32>
    %187 = arith.addf %177, %186 : vector<8x128xf32>
    %188 = math.log %182 : vector<8x128xf32>
    %189 = arith.addf %143, %188 : vector<8x128xf32>
    %190 = arith.subf %189, %187 : vector<8x128xf32>
    %c0_90 = arith.constant 0 : index
    %c0_91 = arith.constant 0 : index
    %191 = vector.load %arg7[%c0_90, %c0_91] : memref<8x128xf32, #tpu.memory_space<vmem>>, vector<8x128xf32>
    %cst_92 = arith.constant 0.000000e+00 : f32
    %192 = vector.broadcast %cst_92 : f32 to vector<8x128xf32>
    %193 = arith.select %8, %190, %192 : vector<8x128xi1>, vector<8x128xf32>
    %194 = arith.addf %191, %193 : vector<8x128xf32>
    %c0_93 = arith.constant 0 : index
    %c0_94 = arith.constant 0 : index
    %195 = vector.load %arg7[%c0_93, %c0_94] : memref<8x128xf32, #tpu.memory_space<vmem>>, vector<8x128xf32>
    tpu.vector_store %arg7[%c0_93, %c0_94], %194 {strides = array<i32>} : memref<8x128xf32, #tpu.memory_space<vmem>>, vector<8x128xf32>,
    %c0_i32_95 = arith.constant 0 : i32
    %196 = arith.cmpi eq, %arg1, %c0_i32_95 : i32
    %197 = arith.extui %196 : i1 to i32
    %c0_i32_96 = arith.constant 0 : i32
    %198 = arith.cmpi ne, %197, %c0_i32_96 : i32
    scf.if %198 {
      %199 = tpu.iota {dimensions = array<i32: 0>} : vector<8x128xi32>
      %c0_i32_97 = arith.constant 0 : i32
      %200 = vector.broadcast %c0_i32_97 : i32 to vector<8x128xi32>
      %201 = arith.cmpi eq, %199, %200 : vector<8x128xi32>
      %c0_98 = arith.constant 0 : index
      %c0_99 = arith.constant 0 : index
      %202 = vector.load %arg4[%c0_98, %c0_99] : memref<8x128xf32, #tpu.memory_space<vmem>>, vector<8x128xf32>
      %203 = vector.shape_cast %202 : vector<8x128xf32> to vector<1x8x128xf32>
      %cst_100 = arith.constant dense<0.000000e+00> : vector<1xf32>
      %204 = vector.multi_reduction <add>, %203, %cst_100 [1, 2] : vector<1x8x128xf32> to vector<1xf32>
      %205 = vector.shape_cast %204 : vector<1xf32> to vector<1x1x1xf32>
      %206 = vector.extract %205[0, 0, 0] : f32 from vector<1x1x1xf32>
      %cst_101 = arith.constant 0.000000e+00 : f32
      %207 = vector.broadcast %206 : f32 to vector<8x128xf32>
      %208 = vector.broadcast %cst_101 : f32 to vector<8x128xf32>
      %209 = arith.select %201, %207, %208 : vector<8x128xi1>, vector<8x128xf32>
      %c1_i32 = arith.constant 1 : i32
      %210 = vector.broadcast %c1_i32 : i32 to vector<8x128xi32>
      %211 = arith.cmpi eq, %199, %210 : vector<8x128xi32>
      %c0_102 = arith.constant 0 : index
      %c0_103 = arith.constant 0 : index
      %212 = vector.load %arg5[%c0_102, %c0_103] : memref<8x128xf32, #tpu.memory_space<vmem>>, vector<8x128xf32>
      %213 = vector.shape_cast %212 : vector<8x128xf32> to vector<1x8x128xf32>
      %cst_104 = arith.constant dense<0.000000e+00> : vector<1xf32>
      %214 = vector.multi_reduction <add>, %213, %cst_104 [1, 2] : vector<1x8x128xf32> to vector<1xf32>
      %215 = vector.shape_cast %214 : vector<1xf32> to vector<1x1x1xf32>
      %216 = vector.extract %215[0, 0, 0] : f32 from vector<1x1x1xf32>
      %cst_105 = arith.constant 0.000000e+00 : f32
      %217 = vector.broadcast %216 : f32 to vector<8x128xf32>
      %218 = vector.broadcast %cst_105 : f32 to vector<8x128xf32>
      %219 = arith.select %211, %217, %218 : vector<8x128xi1>, vector<8x128xf32>
      %220 = arith.addf %209, %219 : vector<8x128xf32>
      %c2_i32 = arith.constant 2 : i32
      %221 = vector.broadcast %c2_i32 : i32 to vector<8x128xi32>
      %222 = arith.cmpi eq, %199, %221 : vector<8x128xi32>
      %c0_106 = arith.constant 0 : index
      %c0_107 = arith.constant 0 : index
      %223 = vector.load %arg6[%c0_106, %c0_107] : memref<8x128xf32, #tpu.memory_space<vmem>>, vector<8x128xf32>
      %224 = vector.shape_cast %223 : vector<8x128xf32> to vector<1x8x128xf32>
      %cst_108 = arith.constant dense<0.000000e+00> : vector<1xf32>
      %225 = vector.multi_reduction <add>, %224, %cst_108 [1, 2] : vector<1x8x128xf32> to vector<1xf32>
      %226 = vector.shape_cast %225 : vector<1xf32> to vector<1x1x1xf32>
      %227 = vector.extract %226[0, 0, 0] : f32 from vector<1x1x1xf32>
      %cst_109 = arith.constant 0.000000e+00 : f32
      %228 = vector.broadcast %227 : f32 to vector<8x128xf32>
      %229 = vector.broadcast %cst_109 : f32 to vector<8x128xf32>
      %230 = arith.select %222, %228, %229 : vector<8x128xi1>, vector<8x128xf32>
      %231 = arith.addf %220, %230 : vector<8x128xf32>
      %c3_i32 = arith.constant 3 : i32
      %232 = vector.broadcast %c3_i32 : i32 to vector<8x128xi32>
      %233 = arith.cmpi eq, %199, %232 : vector<8x128xi32>
      %c0_110 = arith.constant 0 : index
      %c0_111 = arith.constant 0 : index
      %234 = vector.load %arg7[%c0_110, %c0_111] : memref<8x128xf32, #tpu.memory_space<vmem>>, vector<8x128xf32>
      %235 = vector.shape_cast %234 : vector<8x128xf32> to vector<1x8x128xf32>
      %cst_112 = arith.constant dense<0.000000e+00> : vector<1xf32>
      %236 = vector.multi_reduction <add>, %235, %cst_112 [1, 2] : vector<1x8x128xf32> to vector<1xf32>
      %237 = vector.shape_cast %236 : vector<1xf32> to vector<1x1x1xf32>
      %238 = vector.extract %237[0, 0, 0] : f32 from vector<1x1x1xf32>
      %cst_113 = arith.constant 0.000000e+00 : f32
      %239 = vector.broadcast %238 : f32 to vector<8x128xf32>
      %240 = vector.broadcast %cst_113 : f32 to vector<8x128xf32>
      %241 = arith.select %233, %239, %240 : vector<8x128xi1>, vector<8x128xf32>
      %242 = arith.addf %231, %241 : vector<8x128xf32>
      %243 = vector.shape_cast %242 : vector<8x128xf32> to vector<1x8x128xf32>
      %c0_114 = arith.constant 0 : index
      %c0_115 = arith.constant 0 : index
      %c0_116 = arith.constant 0 : index
      %244 = vector.load %arg3[%c0_114, %c0_115, %c0_116] : memref<1x8x128xf32, #tpu.memory_space<vmem>>, vector<1x8x128xf32>
      tpu.vector_store %arg3[%c0_114, %c0_115, %c0_116], %243 {strides = array<i32>} : memref<1x8x128xf32, #tpu.memory_space<vmem>>, vector<1x8x128xf32>,
    } else {
    }
    return
  }
  func.func @transform_0(%arg0: i32, %arg1: i32) -> (i32, i32, i32) {
    %c1_i32 = arith.constant 1 : i32
    %0 = arith.muli %arg0, %c1_i32 : i32
    %1 = arith.addi %0, %arg1 : i32
    %c0_i32 = arith.constant 0 : i32
    %c0_i32_0 = arith.constant 0 : i32
    %c0_i32_1 = arith.constant 0 : i32
    return %c0_i32, %1, %c0_i32_0 : i32, i32, i32
  }
  func.func @transform_1(%arg0: i32, %arg1: i32) -> (i32, i32, i32) {
    %c0_i32 = arith.constant 0 : i32
    %c0_i32_0 = arith.constant 0 : i32
    %c0_i32_1 = arith.constant 0 : i32
    return %arg0, %c0_i32, %c0_i32_0 : i32, i32, i32
  }
}

</mosaic_0001>

<bundles_post_ra>
// kernel: tpu_custom_call.1
= control target key start
LH: loop header
LB: loop body
LE: loop exit
PB: predicated region body
PF: predicated region fallthrough
CT: control target
= control target key end

     0   :  { %6 = vsyncpa [#allocation7], 0  ;;  %s669_s0 = inlined_call_operand.hbm [shape: f32[17,8,128], index: 0, kind: input, shape index: {}]   ;;  %s670_s1 = inlined_call_operand.hbm [shape: f32[1,8,128], index: 1, kind: output, shape index: {}]  }
   0x1   :  { %7 = vsyncpa [#allocation8], 0  ;;  %s15_s8 = sshll.u32 %s669_s0, 4  ;;  %s454_s9 = smov [#allocation6]   ;;  %s16_s8 = int_to_ptr.hbm [resolvable:$true] %s15_s8 }
   0x2   :  { %s17_s10 = sshll.u32 %s454_s9, 4  ;;  %s455_s11 = smov 128   ;;  %s18_s10 = int_to_ptr.vmem [resolvable:$true] %s17_s10 }
   0x3   :  { %s456_s12 = smov 8  }
   0x4   :  { %23 = dma.hbm_to_vmem [thread:$0]  %s16_s8, 2176, %s18_s10, [#allocation7], %s455_s11, %s455_s11, %s456_s12  }
   0x5   :  { %450 = dma.done.wait [#allocation7], 2176  }
   0x6   :  { %451 = vsyncadd [#allocation7], 4294965120  ;;  %v471_v0 = vld [vmem:[#allocation6] sm:$0xff]  ;;  %v62_v1 = vld [vmem:[#allocation6 + $0x8] sm:$0xff]  ;;  %s457_s16 = smov [#allocation9]   ;;  %s342_s20 = sshll.u32 %s670_s1, 4  ;;  %s343_s20 = int_to_ptr.hbm [resolvable:$true] %s342_s20 }
   0x7   :  { %v43_v2 = vand.u32 2147483647, %v471_v0  ;;  %v64_v3 = vld [vmem:[#allocation6 + $0x10] sm:$0xff]  ;;  %v474_v4 = vld [vmem:[#allocation6 + $0x18] sm:$0xff]  ;;  %v476_v5 = vld [vmem:[#allocation6 + $0x20] sm:$0xff]  ;;  %v42_v22 = vmax.f32 %v471_v0, 0.0 }
   0x8   :  { %v352_v6 = vmul.f32 -1.442695, %v62_v1  ;;  %v353_v8 = vmul.f32 -1.442695, %v64_v3  ;;  %v478_v9 = vld [vmem:[#allocation6 + $0x60] sm:$0xff]  ;;  %v482_v13 = vld [vmem:[#allocation6 + $0x68] sm:$0xff] }
   0x9   :  { %v44_v7 = vsub.f32 0.0, %v43_v2  ;;  %v119_v10 = vmul.f32 1.442695, %v474_v4  ;;  %v122_v11 = vmul.f32 1.442695, %v476_v5  ;;  %v484_v14 = vld [vmem:[#allocation6 + $0x78] sm:$0xff] }
   0xa   :  { %366 = vpow2.f32 %v352_v6  ;;  %v486_v15 = vld [vmem:[#allocation6 + $0x80] sm:$0xff]  ;;  %v489_v16 = vmul.f32 0.5, %v478_v9  ;;  %v491_v17 = vld [vmem:[#allocation6 + $0x50] sm:$0xff]  ;;  %v494_v18 = vmul.f32 0.5, %v482_v13  ;;  %v497_v19 = vld [vmem:[#allocation6 + $0x28] sm:$0xff]  ;;  %vm179_vm0 = vweird.f32 %v484_v14  ;;  %s340_s17 = sshll.u32 %s457_s16, 4  ;;  %s341_s17 = int_to_ptr.vmem [resolvable:$true] %s340_s17 }
   0xb   :  { %v45_v12 = vmul.f32 1.442695, %v44_v7  ;;  %368 = vpow2.f32 %v353_v8  ;;  %v499_v20 = vld [vmem:[#allocation6 + $0x30] sm:$0xff]  ;;  %v502_v23 = vld [vmem:[#allocation6 + $0x58] sm:$0xff]  ;;  %v183_v27 = vand.u32 2147483647, %v484_v14  ;;  %vm197_vm2 = vweird.f32 %v486_v15 }
   0xc   :  { %370 = vpow2.f32 %v119_v10  ;;  %v128_v26 = vsub.f32 %v491_v17, %v489_v16  ;;  %v185_v28 = vand.u32 2147483648, %v484_v14  ;;  %v201_v31 = vand.u32 2147483647, %v486_v15  ;;  %v523_v38 = vld [vmem:[#allocation6 + $0x38] sm:$0xff]  ;;  %v525_v40 = vld [vmem:[#allocation6 + $0x48] sm:$0xff]  ;;  %v542_v55 = vld [vmem:[#allocation6 + $0x40] sm:$0xff] }
   0xd   :  { %372 = vpow2.f32 %v45_v12  ;;  %v203_v32 = vand.u32 2147483648, %v486_v15  ;;  %v229_v33 = vmax.f32 %v497_v19, %v499_v20  ;;  %v133_v37 = vsub.f32 %v502_v23, %v494_v18 }
   0xe   :  { %374 = vpow2.f32 %v122_v11  ;;  %vm529_vm1 = vcmp.eq.f32.partialorder %v183_v27, 8.507059e+37  ;;  %v186_v47 = vor.u32 1.1754944e-38, %v185_v28  ;;  %vm534_vm3 = vcmp.eq.f32.partialorder %v201_v31, 8.507059e+37 }
   0xf   :  { %376 = vrcp.f32 %v484_v14  ;;  %v204_v50 = vor.u32 1.1754944e-38, %v203_v32  ;;  %v232_v51 = vmax.f32 %v229_v33, %v523_v38  ;;  %vm41_vm4 = vcmp.eq.f32.partialorder %v525_v40, 0.0 }
  0x10   :  { %v367_v21 = vpop.eup %366  ;;  %378 = vrcp.f32 %v486_v15  ;;  %v139_v61 = vadd.f32 %v494_v18, %v502_v23 }
  0x11   :  { %v369_v24 = vpop.eup %368  ;;  %v505_v25 = vadd.f32 1.0, %v367_v21  ;;  %v567_v7 = vmax.f32 %v232_v51, %v542_v55 }
  0x12   :  { %v371_v29 = vpop.eup %370  ;;  %v512_v30 = vadd.f32 1.0, %v369_v24 }
  0x13   :  { %v373_v34 = vpop.eup %372  ;;  %380 = vrcp.f32 %v505_v25  ;;  %v94_v35 = vand.u32 2147483647, %v505_v25  ;;  %v96_v36 = vand.u32 2147483648, %v505_v25  ;;  %vm90_vm5 = vweird.f32 %v505_v25 }
  0x14   :  { %v375_v39 = vpop.eup %374  ;;  %v47_v41 = vadd.f32 1.0, %v373_v34  ;;  %v50_v42 = vmul.f32 -0.5, %v373_v34  ;;  %v53_v43 = vand.u32 2147483647, %v373_v34  ;;  %382 = vrcp.f32 %v512_v30 }
  0x15   :  { %v377_v44 = vpop.eup %376  ;;  %v113_v45 = vand.u32 2147483647, %v512_v30  ;;  %v97_v53 = vor.u32 1.1754944e-38, %v96_v36  ;;  %vm548_vm7 = vcmp.eq.f32.partialorder %v94_v35, 8.507059e+37  ;;  %vm109_vm8 = vweird.f32 %v512_v30 }
  0x16   :  { %v379_v48 = vpop.eup %378  ;;  %384 = vlog2.f32 %v47_v41  ;;  %v51_v52 = vadd.f32 1.0, %v50_v42  ;;  %v175_v54 = vmul.f32 %v377_v44, %v484_v14  ;;  %vm544_vm6 = vcmp.lt.f32.partialorder %v53_v43, 0.0004427343 }
  0x17   :  { %v115_v58 = vand.u32 2147483648, %v512_v30  ;;  %v193_v59 = vmul.f32 %v379_v48, %v486_v15  ;;  %vm555_vm9 = vcmp.eq.f32.partialorder %v113_v45, 8.507059e+37  ;;  %v560_v62 = vmul.f32 %v371_v29, %v484_v14 }
  0x18   :  { %v563_v63 = vmul.f32 %v375_v39, %v486_v15  ;;  %v176_v1 = vsub.f32 1.0, %v175_v54  ;;  %vm180_vm10 = vweird.f32 %v377_v44  ;;  %vm198_vm11 = vweird.f32 %v379_v48 }
  0x19   :  { %v381_v60 = vpop.eup %380  ;;  %v194_v6 = vsub.f32 1.0, %v193_v59  ;;  %v52_v8 = vmul.f32 %v373_v34, %v51_v52  ;;  %vm572_vm14 = vmor %vm179_vm0, %vm180_vm10  ;;  %v238_v28 = vsub.f32 %v497_v19, %v567_v7  ;;  %v245_v14 = vsub.f32 %v499_v20, %v567_v7 }
  0x1a   :  { %v383_v2 = vpop.eup %382  ;;  %v86_v3 = vmul.f32 %v381_v60, %v505_v25  ;;  %vm91_vm12 = vweird.f32 %v381_v60  ;;  %v177_v11 = vmul.f32 %v377_v44, %v176_v1  ;;  %vm581_vm15 = vmor %vm197_vm2, %vm198_vm11  ;;  %v116_v35 = vor.u32 1.1754944e-38, %v115_v58 }
  0x1b   :  { %v105_v10 = vmul.f32 %v383_v2, %v512_v30  ;;  %vm110_vm13 = vweird.f32 %v383_v2  ;;  %v195_v27 = vmul.f32 %v379_v48, %v194_v6  ;;  %v239_v39 = vmul.f32 1.442695, %v238_v28  ;;  %vm592_vm0 = vmor %vm90_vm5, %vm91_vm12 }
  0x1c   :  { %v385_v12 = vpop.eup %384  ;;  %v87_v21 = vsub.f32 1.0, %v86_v3  ;;  %v178_v32 = vadd.f32 %v377_v44, %v177_v11  ;;  %v246_v45 = vmul.f32 1.442695, %v245_v14  ;;  %vm605_vm2 = vmor %vm109_vm8, %vm110_vm13  ;;  %v125_v58 = vmul.f32 0.5, %v560_v62 }
  0x1d   :  { %v49_v29 = vmul.f32 0.6931472, %v385_v12  ;;  %v106_v31 = vsub.f32 1.0, %v105_v10  ;;  %v196_v36 = vadd.f32 %v379_v48, %v195_v27  ;;  %v130_v46 = vmul.f32 0.5, %v563_v63 }
  0x1e   :  { %v88_v34 = vmul.f32 %v381_v60, %v87_v21  ;;  %v182_v43 = vsel %vm572_vm14, %v377_v44, %v178_v32  ;;  %386 = vpow2.f32 %v239_v39  ;;  %v136_v6 = vadd.f32 %v489_v16, %v491_v17 }
  0x1f   :  { %v55_v41 = vsel %vm544_vm6, %v52_v8, %v49_v29  ;;  %v107_v15 = vmul.f32 %v383_v2, %v106_v31  ;;  %v187_v25 = vsel %vm529_vm1, %v186_v47, %v182_v43  ;;  %v200_v56 = vsel %vm581_vm15, %v379_v48, %v196_v36  ;;  %v237_v31 = vld [vmem:[#allocation6 + $0x70] sm:$0xff] }
  0x20   :  { %v600_v51 = vadd.f32 %v55_v41, %v42_v22  ;;  %v89_v52 = vadd.f32 %v381_v60, %v88_v34  ;;  %v188_v22 = vmul.f32 %v187_v25, %v478_v9  ;;  %v205_v59 = vsel %vm534_vm3, %v204_v50, %v200_v56 }
  0x21   :  { %v108_v44 = vadd.f32 %v383_v2, %v107_v15  ;;  %v206_v47 = vmul.f32 %v205_v59, %v482_v13  ;;  %388 = vpow2.f32 %v246_v45  ;;  %v148_v21 = vmul.f32 %v482_v13, %v478_v9 }
  0x22   :  { %v58_v30 = vsel %vm41_vm4, %v600_v51, 0.0  ;;  %v93_v1 = vsel %vm592_vm0, %v381_v60, %v89_v52  ;;  %v189_v49 = vadd.f32 1e-16, %v188_v22  ;;  %v259_v24 = vsub.f32 %v542_v55, %v567_v7 }
  0x23   :  { %281 = vadd.xlane.f32.xlu0 %v58_v30  ;;  %v98_v48 = vsel %vm548_vm7, %v97_v53, %v93_v1  ;;  %v112_v3 = vsel %vm605_vm2, %v383_v2, %v108_v44  ;;  %v207_v60 = vadd.f32 1e-16, %v206_v47  ;;  %v252_v2 = vsub.f32 %v523_v38, %v567_v7 }
  0x24   :  { %v117_v50 = vsel %vm555_vm9, %v116_v35, %v112_v3  ;;  %v126_v8 = vsub.f32 %v98_v48, %v125_v58  ;;  %v135_v10 = vadd.f32 %v125_v58, %v98_v48  ;;  %390 = vlog2.f32 %v189_v49  ;;  %v387_v28 = vpop.eup %386 }
  0x25   :  { %v210_v11 = vsub.f32 %v98_v48, %v491_v17  ;;  %v131_v57 = vsub.f32 %v117_v50, %v130_v46  ;;  %392 = vlog2.f32 %v207_v60  ;;  %v212_v53 = vsub.f32 %v117_v50, %v502_v23 }
  0x26   :  { %v138_v12 = vadd.f32 %v130_v46, %v117_v50  ;;  %v253_v27 = vmul.f32 1.442695, %v252_v2  ;;  %v260_v32 = vmul.f32 1.442695, %v259_v24  ;;  %v129_v33 = vmax.f32 %v126_v8, %v128_v26 }
  0x27   :  { %v211_v29 = vmul.f32 %v210_v11, %v210_v11  ;;  %v389_v14 = vpop.eup %388  ;;  %v213_v34 = vmul.f32 %v212_v53, %v212_v53  ;;  %v134_v35 = vmax.f32 %v131_v57, %v133_v37  ;;  %v137_v9 = vmin.f32 %v135_v10, %v136_v6 }
  0x28   :  { %394 = vpow2.f32 %v253_v27  ;;  %v149_v36 = vand.u32 2147483647, %v148_v21  ;;  %v140_v39 = vmin.f32 %v138_v12, %v139_v61  ;;  %v146_v41 = vmul.f32 %v563_v63, %v560_v62 }
  0x29   :  { %396 = vpow2.f32 %v260_v32  ;;  %vm242_vm1 = vcmp.eq.f32.partialorder %v237_v31, 0.0  ;;  %v141_v16 = vsub.f32 %v137_v9, %v129_v33  ;;  %v248_v26 = vadd.f32 %v389_v14, %v387_v28 }
  0x2a   :  { %v391_v13 = vpop.eup %390  ;;  %v143_v43 = vsub.f32 %v140_v39, %v134_v35  ;;  %v147_v45 = vand.u32 2147483647, %v146_v41  ;;  %v214_v52 = vadd.f32 %v213_v34, %v211_v29  ;;  %vm249_vm3 = vcmp.eq.f32.partialorder %v237_v31, 1.0 }
  0x2b   :  { %v393_v42 = vpop.eup %392  ;;  %v191_v15 = vmul.f32 0.6931472, %v391_v13  ;;  %v142_v23 = vmax.f32 %v141_v16, 0.0  ;;  %v243_v62 = vsel %vm242_vm1, %v497_v19, 0.0  ;;  %v250_v22 = vsel %vm249_vm3, %v499_v20, 0.0 }
  0x2c   :  { %v209_v17 = vmul.f32 0.6931472, %v393_v42  ;;  %v144_v54 = vmax.f32 %v143_v43, 0.0  ;;  %v150_v25 = vadd.f32 %v149_v36, %v147_v45  ;;  %vm256_vm4 = vcmp.eq.f32.partialorder %v237_v31, 2.0 }
  0x2d   :  { %v215_v18 = vsub.f32 %v474_v4, %v191_v15  ;;  %vm40_vm5 = vcmp.eq.f32.partialorder %v525_v40, 1.0  ;;  %v257_v48 = vsel %vm256_vm4, %v523_v38, 0.0  ;;  %vm263_vm6 = vcmp.eq.f32.partialorder %v237_v31, 3.0 }
  0x2e   :  { %v218_v37 = vsub.f32 %v476_v5, %v209_v17  ;;  %v395_v56 = vpop.eup %394  ;;  %v145_v30 = vmul.f32 %v144_v54, %v142_v23  ;;  %v251_v5 = vadd.f32 %v250_v22, %v243_v62  ;;  %v264_v49 = vsel %vm263_vm6, %v542_v55, 0.0 }
  0x2f   :  { %v216_v44 = vmul.f32 %v215_v18, %v215_v18  ;;  %v397_v63 = vpop.eup %396  ;;  %v255_v59 = vadd.f32 %v395_v56, %v248_v26  ;;  %v277_v62 = vlaneseq }
  0x30   :  { %v219_v58 = vmul.f32 %v218_v37, %v218_v37  ;;  %v151_v46 = vsub.f32 %v150_v25, %v145_v30  ;;  %v258_v20 = vadd.f32 %v257_v48, %v251_v5 }
  0x31   :  { %v217_v1 = vadd.f32 %v216_v44, %v214_v52  ;;  %v262_v4 = vadd.f32 %v397_v63, %v255_v59  ;;  %v278_v63 = vshrl.u32 %v277_v62, 7 }
  0x32   :  { %v152_v3 = vadd.f32 1e-06, %v151_v46  ;;  %v265_v6 = vadd.f32 %v264_v49, %v258_v20 }
  0x33   :  { %v220_v47 = vadd.f32 %v219_v58, %v217_v1  ;;  %398 = vlog2.f32 %v262_v4  ;;  %vm279_vm11 = vcmp.eq.s32.totalorder %v278_v63, 0  ;;  %vm292_vm12 = vcmp.eq.s32.totalorder %v278_v63, 1 }
  0x34   :  { %400 = vrcp.f32 %v152_v3  ;;  %vm158_vm7 = vweird.f32 %v152_v3  ;;  %v164_v38 = vand.u32 2147483648, %v152_v3  ;;  %v162_v2 = vand.u32 2147483647, %v152_v3 }
  0x35   :  { %v222_v19 = vsel %vm40_vm5, %v220_v47, 0.0  ;;  %vm306_vm13 = vcmp.eq.s32.totalorder %v278_v63, 2  ;;  %vm320_vm14 = vcmp.eq.s32.totalorder %v278_v63, 3 }
  0x36   :  { %308 = vadd.xlane.f32.xlu1 %v222_v19  ;;  %v165_v55 = vor.u32 1.1754944e-38, %v164_v38  ;;  %vm163_vm10 = vcmp.eq.f32.partialorder %v162_v2, 8.507059e+37 }
  0x39   :  { %v399_v50 = vpop.eup %398 }
  0x3a   :  { %v267_v60 = vmul.f32 0.6931472, %v399_v50  ;;  %v401_v8 = vpop.eup %400 }
  0x3b   :  { %v154_v11 = vmul.f32 %v401_v8, %v152_v3  ;;  %vm159_vm8 = vweird.f32 %v401_v8 }
  0x3c   :  { %v268_v10 = vadd.f32 %v267_v60, %v567_v7  ;;  %vm160_vm9 = vmor %vm158_vm7, %vm159_vm8 }
  0x3d   :  { %v155_v53 = vsub.f32 1.0, %v154_v11 }
  0x3e   :  { %v269_v57 = vsub.f32 %v268_v10, %v265_v6 }
  0x3f   :  { %v156_v61 = vmul.f32 %v401_v8, %v155_v53 }
  0x40   :  { %v271_v12 = vsel %vm40_vm5, %v269_v57, 0.0 }
  0x41   :  { %322 = vadd.xlane.f32.xlu1 %v271_v12  ;;  %v157_v21 = vadd.f32 %v401_v8, %v156_v61 }
  0x43   :  { %v161_v24 = vsel %vm160_vm9, %v401_v8, %v157_v21 }
  0x44   :  { %v166_v27 = vsel %vm163_vm10, %v165_v55, %v161_v24 }
  0x45   :  { %v167_v28 = vmul.f32 %v166_v27, %v145_v30 }
  0x47   :  { %v169_v7 = vmul.f32 %v167_v28, %v471_v0 }
  0x49   :  { %v170_v29 = vsub.f32 %v600_v51, %v169_v7 }
  0x4b   :  { %v171_v31 = vsel %vm40_vm5, %v170_v29, 0.0 }
  0x4c   :  { %294 = vadd.xlane.f32.xlu0 %v171_v31 }
  0x96   :  { %v282_v32 = vpop.xlane.xlu0 %281 }
  0x97   :  { %v283_v33 = vrot.slane %v282_v32, 4 }
  0x99   :  { %v284_v14 = vadd.f32 %v283_v33, %v282_v32 }
  0x9b   :  { %v285_v34 = vrot.slane %v284_v14, 2 }
  0x9d   :  { %v286_v35 = vadd.f32 %v285_v34, %v284_v14 }
  0x9f   :  { %v287_v9 = vrot.slane %v286_v35, 1 }
  0xa1   :  { %v288_v13 = vadd.f32 %v287_v9, %v286_v35 }
  0xa3   :  { %354 = vpush %v288_v13 }
  0xa9   :  { %v309_v36 = vpop.xlane.xlu1 %308 }
  0xaa   :  { %v310_v41 = vrot.slane %v309_v36, 4 }
  0xac   :  { %v311_v15 = vadd.f32 %v310_v41, %v309_v36 }
  0xae   :  { %v312_v16 = vrot.slane %v311_v15, 2 }
  0xb0   :  { %v313_v43 = vadd.f32 %v312_v16, %v311_v15 }
  0xb2   :  { %v314_v23 = vrot.slane %v313_v43, 1 }
  0xb4   :  { %v323_v39 = vpop.xlane.xlu1 %322  ;;  %v315_v56 = vadd.f32 %v314_v23, %v313_v43 }
  0xb5   :  { %v324_v42 = vrot.slane %v323_v39, 4 }
  0xb7   :  { %v325_v0 = vadd.f32 %v324_v42, %v323_v39 }
  0xb9   :  { %v326_v17 = vrot.slane %v325_v0, 2 }
  0xbb   :  { %v327_v45 = vadd.f32 %v326_v17, %v325_v0 }
  0xbd   :  { %v328_v54 = vrot.slane %v327_v45, 1 }
  0xbf   :  { %v295_v51 = vpop.xlane.xlu0 %294  ;;  %v329_v44 = vadd.f32 %v328_v54, %v327_v45 }
  0xc0   :  { %v296_v40 = vrot.slane %v295_v51, 4 }
  0xc2   :  { %v297_v26 = vadd.f32 %v296_v40, %v295_v51 }
  0xc4   :  { %v298_v52 = vrot.slane %v297_v26, 2 }
  0xc6   :  { %v299_v18 = vadd.f32 %v298_v52, %v297_v26 }
  0xc8   :  { %v300_v37 = vrot.slane %v299_v18, 1 }
  0xca   :  { %v301_v25 = vadd.f32 %v300_v37, %v299_v18 }
  0xcc   :  { %356 = vpush %v301_v25 }
  0xcd   :  { %358 = vpush %v315_v56 }
  0xce   :  { %360 = vpush %v329_v44 }
  0xd4   :  { %s355_s0 = spop %354 }
  0xd5   :  { %v290_v58 = vstv %s355_s0 }
  0xd6   :  { %v291_v59 = vsel %vm279_vm11, %v290_v58, 0.0 }
  0xfd   :  { %s357_s13 = spop %356 }
  0xfe   :  { %v303_v22 = vstv %s357_s13  ;;  %s359_s14 = spop %358 }
  0xff   :  { %v304_v30 = vsel %vm292_vm12, %v303_v22, 0.0  ;;  %v317_v1 = vstv %s359_s14  ;;  %s361_s15 = spop %360 }
 0x100   :  { %v305_v4 = vadd.f32 %v304_v30, %v291_v59  ;;  %v331_v46 = vstv %s361_s15  ;;  %v318_v47 = vsel %vm306_vm13, %v317_v1, 0.0 }
 0x101   :  { %v332_v48 = vsel %vm320_vm14, %v331_v46, 0.0 }
 0x102   :  { %v319_v5 = vadd.f32 %v318_v47, %v305_v4 }
 0x104   :  { %v333_v3 = vadd.f32 %v332_v48, %v319_v5 }
 0x106   :  { %334 = vst [vmem:[#allocation9] sm:$0xff] %v333_v3 }
 0x107   :  { %345 = dma.vmem_to_hbm [thread:$0]  %s341_s17, 128, %s343_s20, [#allocation8]  }
 0x108   :  { %452 = dma.done.wait [#allocation8], 128  }
 0x109   :  { %453 = vsyncadd [#allocation8], 4294967168 }
 0x10a   :  { %350 = vsyncpa [#allocation7], 1 }
 0x10b   :  { %351 = vsyncpa [#allocation8], 1 }

</bundles_post_ra>
